<compile_context>
chip_gen: v6e
topology: v6e:2x2x1
jax: 0.10.0
libtpu: 0.0.40
codegen_flags: <defaults>
</compile_context>

<pallas_src>
import jax
import jax.numpy as jnp
from jax.experimental import pallas as pl
from jax.experimental.pallas import tpu as pltpu


def gconv_kernel(a_ref, x_ref, w_ref, b_ref, o_ref):
    # a_ref: (Bblk, N, N)   x_ref: (Bblk, N, Din)
    # w_ref: (Din, 2*Dout)  b_ref: (1, 2*Dout)
    # o_ref: (Bblk, N, Dout)
    bblk, n, din = x_ref.shape
    dout = w_ref.shape[-1] // 2

    # ---- column-wise L1 normalization of A (torch F.normalize p=1, dim=-2) ----
    # One vectorized reduction over the whole block; the (bblk, 1, n) divisor
    # broadcasts along the sublane axis (no transpose needed).
    a = a_ref[...].astype(jnp.float32)                        # (bblk, n, n)
    col_l1 = jnp.sum(jnp.abs(a), axis=1, keepdims=True)       # (bblk, 1, n)
    a_norm = a / jnp.maximum(col_l1, 1e-12)                   # exact divide

    # ---- fused linear layers: one MXU matmul with M = bblk*n rows -----------
    # The (bblk, n, din) -> (bblk*n, din) fold is a free relayout when
    # bblk == 1 or n % 8 == 0 (sublane aligned).
    # TODO(synk): for sublane-unaligned n, keep x 3-D and broadcast W per batch
    #             to avoid the materialized reshape copy.
    x32 = x_ref[...].astype(jnp.float32).reshape(bblk * n, din)
    y = jnp.dot(x32, w_ref[...].astype(jnp.float32),
                preferred_element_type=jnp.float32)           # (bblk*n, 2*dout)
    y = jnp.maximum(y + b_ref[...].astype(jnp.float32), 0.0)  # relu(ax)||relu(ux)
    y = y.reshape(bblk, n, 2 * dout)

    relu_ax = y[..., :dout]                                   # (bblk, n, dout)
    relu_ux = y[..., dout:]                                   # (bblk, n, dout)

    # ---- batched A_norm @ relu(ax): one einsum instead of bblk tiny dots ----
    bmm = jnp.einsum("bij,bjd->bid", a_norm, relu_ax,
                     preferred_element_type=jnp.float32)      # (bblk, n, dout)

    o_ref[...] = (bmm + relu_ux).astype(o_ref.dtype)


def _vmem_capacity_bytes():
    """Physical VMEM of the current chip; conservative fallback = v7x (64 MiB)."""
    try:
        return int(pltpu.get_tpu_info().vmem_capacity_bytes)
    except Exception:  # noqa: BLE001 - any failure -> safe floor
        return 64 * 1024 * 1024


def _pick_block_batch(B, N, Din, Dout, a_itemsize, x_itemsize, vmem_budget):
    """Largest batch-block (divisor of B) whose full double-buffered working
    set fits the VMEM budget, while always leaving >= 2 grid steps when B >= 2
    (keeps BlockSpec double-buffering alive and feeds both v7x TensorCores)."""

    def working_set(bblk):
        a_blk = bblk * N * N * a_itemsize
        x_blk = bblk * N * Din * x_itemsize
        o_blk = bblk * N * Dout * x_itemsize
        a_f32 = bblk * N * N * 4              # normalized-A f32 temp
        y_f32 = bblk * N * 2 * Dout * 4       # fused-linear f32 result
        bmm_f32 = bblk * N * Dout * 4         # batched matmul f32 result
        # 2x for the double-buffered pipelined operands/outputs.
        return 2 * (a_blk + x_blk + o_blk) + a_f32 + y_f32 + bmm_f32

    best = 1
    for bblk in range(1, B + 1):
        if B % bblk:
            continue
        if working_set(bblk) > vmem_budget:
            break
        if B >= 2 and B // bblk < 2:          # never degenerate to a 1-step grid
            break
        best = bblk
        if bblk * N >= 512:                   # fused-linear M already MXU-friendly
            break
    return best


@jax.jit
def gconv_pallas(A, x, wa, ba, wu, bu):
    B, N, _ = A.shape
    Din = x.shape[-1]
    Dout = wa.shape[-1]

    # Host-side weight fusion: one matmul instead of two.
    w_fused = jnp.concatenate([wa, wu], axis=-1)     # (Din, 2*Dout)
    b_fused = jnp.concatenate([ba, bu], axis=-1)     # (1, 2*Dout)

    vmem_cap = _vmem_capacity_bytes()
    bblk = _pick_block_batch(
        B, N, Din, Dout,
        jnp.dtype(A.dtype).itemsize, jnp.dtype(x.dtype).itemsize,
        vmem_budget=vmem_cap // 2)
    g = B // bblk
    vmem_limit = min((vmem_cap * 3) // 4, 96 * 1024 * 1024)

    grid_spec = pltpu.PrefetchScalarGridSpec(
        num_scalar_prefetch=0,
        grid=(g,),
        in_specs=[
            pl.BlockSpec((bblk, N, N), lambda i: (i, 0, 0)),      # A block
            pl.BlockSpec((bblk, N, Din), lambda i: (i, 0, 0)),    # x block
            pl.BlockSpec((Din, 2 * Dout), lambda i: (0, 0)),      # fused W
            pl.BlockSpec((1, 2 * Dout), lambda i: (0, 0)),        # fused b
        ],
        out_specs=pl.BlockSpec((bblk, N, Dout), lambda i: (i, 0, 0)),
    )

    return pl.pallas_call(
        gconv_kernel,
        out_shape=jax.ShapeDtypeStruct((B, N, Dout), x.dtype),
        grid_spec=grid_spec,
        compiler_params=pltpu.CompilerParams(
            dimension_semantics=("parallel",),
            vmem_limit_bytes=int(vmem_limit)),
    )(A, x, w_fused, b_fused)


def gconv_reference(A, x, wa, ba, wu, bu):
    # Pure-JAX reference mirroring the PyTorch forward.
    col_l1 = jnp.sum(jnp.abs(A), axis=-2, keepdims=True)
    A_norm = A / jnp.maximum(col_l1, 1e-12)
    ax = x @ wa + ba
    ux = x @ wu + bu
    return jnp.einsum("bij,bjd->bid", A_norm, jax.nn.relu(ax)) + jax.nn.relu(ux)


if __name__ == "__main__":
    # Small shapes consistent with the module: batch=2, n=8 nodes,
    # in_features=16, out_features=32.
    B, N, Din, Dout = 2, 8, 16, 32

    key = jax.random.PRNGKey(0)
    k_a, k_x, k_wa, k_ba, k_wu, k_bu = jax.random.split(key, 6)

    # Connectivity matrix in {0,1}; bf16 storage is exact for a binary mask and
    # halves A's HBM traffic / VMEM footprint.  The kernel upcasts to f32.
    A = (jax.random.uniform(k_a, (B, N, N)) > 0.5).astype(jnp.bfloat16)
    x = jax.random.normal(k_x, (B, N, Din), dtype=jnp.float32)

    # nn.Linear-style init (uniform in [-1/sqrt(fan_in), 1/sqrt(fan_in)]),
    # weights pre-transposed to (Din, Dout) so the kernel does x @ W.
    bound = 1.0 / (Din ** 0.5)
    wa = jax.random.uniform(k_wa, (Din, Dout), minval=-bound, maxval=bound)
    ba = jax.random.uniform(k_ba, (1, Dout), minval=-bound, maxval=bound)
    wu = jax.random.uniform(k_wu, (Din, Dout), minval=-bound, maxval=bound)
    bu = jax.random.uniform(k_bu, (1, Dout), minval=-bound, maxval=bound)

    out = gconv_pallas(A, x, wa, ba, wu, bu)
    jax.block_until_ready(out)

    ref = gconv_reference(A.astype(jnp.float32), x, wa, ba, wu, bu)
    assert out.shape == (B, N, Dout), out.shape
    assert jnp.allclose(out, ref, atol=1e-5, rtol=1e-5), float(
        jnp.max(jnp.abs(out - ref)))

    print("KERNEL_OK")
</pallas_src>

<mosaic_0001>
module attributes {stable_mosaic.version = 11 : i64} {
  func.func @gconv_kernel(%arg0: i32, %arg1: memref<1x8x8xbf16, #tpu.memory_space<vmem>>, %arg2: memref<1x8x16xf32, #tpu.memory_space<vmem>>, %arg3: memref<16x64xf32, #tpu.memory_space<vmem>>, %arg4: memref<1x64xf32, #tpu.memory_space<vmem>>, %arg5: memref<1x8x32xf32, #tpu.memory_space<vmem>>) attributes {dimension_semantics = [#tpu.dimension_semantics<parallel>], iteration_bounds = array<i64: 2>, scalar_prefetch = 0 : i64, scratch_operands = 0 : i64, tpu.core_type = #tpu.core_type<tc>, window_params = [{transform_indices = @transform_0, window_bounds = array<i64: 1, 8, 8>}, {transform_indices = @transform_1, window_bounds = array<i64: 1, 8, 16>}, {pipeline_mode = #tpu.pipeline_mode<synchronous>, transform_indices = @transform_2, window_bounds = array<i64: 16, 64>}, {pipeline_mode = #tpu.pipeline_mode<synchronous>, transform_indices = @transform_3, window_bounds = array<i64: 1, 64>}, {transform_indices = @transform_4, window_bounds = array<i64: 1, 8, 32>}]} {
    %c0 = arith.constant 0 : index
    %c0_0 = arith.constant 0 : index
    %c0_1 = arith.constant 0 : index
    %0 = vector.load %arg1[%c0, %c0_0, %c0_1] : memref<1x8x8xbf16, #tpu.memory_space<vmem>>, vector<1x8x8xbf16>
    %1 = arith.extf %0 : vector<1x8x8xbf16> to vector<1x8x8xf32>
    %2 = math.absf %1 : vector<1x8x8xf32>
    %cst = arith.constant dense<0.000000e+00> : vector<1x8xf32>
    %3 = vector.multi_reduction <add>, %2, %cst [1] : vector<1x8x8xf32> to vector<1x8xf32>
    %4 = vector.shape_cast %3 : vector<1x8xf32> to vector<1x1x8xf32>
    %cst_2 = arith.constant 9.99999996E-13 : f32
    %5 = vector.broadcast %cst_2 : f32 to vector<1x1x8xf32>
    %6 = arith.maximumf %4, %5 : vector<1x1x8xf32>
    %7 = vector.broadcast %6 : vector<1x1x8xf32> to vector<1x8x8xf32>
    %8 = arith.divf %1, %7 : vector<1x8x8xf32>
    %c0_3 = arith.constant 0 : index
    %c0_4 = arith.constant 0 : index
    %c0_5 = arith.constant 0 : index
    %9 = vector.load %arg2[%c0_3, %c0_4, %c0_5] : memref<1x8x16xf32, #tpu.memory_space<vmem>>, vector<1x8x16xf32>
    %10 = vector.shape_cast %9 : vector<1x8x16xf32> to vector<8x16xf32>
    %c0_6 = arith.constant 0 : index
    %c0_7 = arith.constant 0 : index
    %11 = vector.load %arg3[%c0_6, %c0_7] : memref<16x64xf32, #tpu.memory_space<vmem>>, vector<16x64xf32>
    %cst_8 = arith.constant dense<0.000000e+00> : vector<8x64xf32>
    %12 = tpu.matmul %10, %11, %cst_8 {dimension_numbers = #tpu.dot_dimension_numbers<[1], [0], [0], [1], [0, 0, 1, 1], [], []>} : vector<8x16xf32>, vector<16x64xf32>, vector<8x64xf32> -> vector<8x64xf32>
    %c0_9 = arith.constant 0 : index
    %c0_10 = arith.constant 0 : index
    %13 = vector.load %arg4[%c0_9, %c0_10] : memref<1x64xf32, #tpu.memory_space<vmem>>, vector<1x64xf32>
    %14 = vector.broadcast %13 : vector<1x64xf32> to vector<8x64xf32>
    %15 = arith.addf %12, %14 : vector<8x64xf32>
    %cst_11 = arith.constant 0.000000e+00 : f32
    %16 = vector.broadcast %cst_11 : f32 to vector<8x64xf32>
    %17 = arith.maximumf %15, %16 : vector<8x64xf32>
    %18 = vector.shape_cast %17 : vector<8x64xf32> to vector<1x8x64xf32>
    %19 = vector.extract_strided_slice %18 {offsets = [0, 0, 0], sizes = [1, 8, 32], strides = [1, 1, 1]} : vector<1x8x64xf32> to vector<1x8x32xf32>
    %20 = vector.extract_strided_slice %18 {offsets = [0, 0, 32], sizes = [1, 8, 32], strides = [1, 1, 1]} : vector<1x8x64xf32> to vector<1x8x32xf32>
    "tpu.trace_start"() <{level = 10 : i32, message = "bij,bjd->bid"}> : () -> ()
    %cst_12 = arith.constant dense<0.000000e+00> : vector<1x8x32xf32>
    %21 = tpu.matmul %8, %19, %cst_12 {dimension_numbers = #tpu.dot_dimension_numbers<[2], [1], [1], [2], [0, 0, 0, 1, 1, 2], [0], [0]>} : vector<1x8x8xf32>, vector<1x8x32xf32>, vector<1x8x32xf32> -> vector<1x8x32xf32>
    "tpu.trace_stop"() : () -> ()
    %22 = arith.addf %21, %20 : vector<1x8x32xf32>
    %c0_13 = arith.constant 0 : index
    %c0_14 = arith.constant 0 : index
    %c0_15 = arith.constant 0 : index
    %23 = vector.load %arg5[%c0_13, %c0_14, %c0_15] : memref<1x8x32xf32, #tpu.memory_space<vmem>>, vector<1x8x32xf32>
    tpu.vector_store %arg5[%c0_13, %c0_14, %c0_15], %22 {strides = array<i32>} : memref<1x8x32xf32, #tpu.memory_space<vmem>>, vector<1x8x32xf32>,
    return
  }
  func.func @transform_0(%arg0: i32) -> (i32, i32, i32) {
    %c0_i32 = arith.constant 0 : i32
    %c0_i32_0 = arith.constant 0 : i32
    %c0_i32_1 = arith.constant 0 : i32
    return %arg0, %c0_i32, %c0_i32_0 : i32, i32, i32
  }
  func.func @transform_1(%arg0: i32) -> (i32, i32, i32) {
    %c0_i32 = arith.constant 0 : i32
    %c0_i32_0 = arith.constant 0 : i32
    %c0_i32_1 = arith.constant 0 : i32
    return %arg0, %c0_i32, %c0_i32_0 : i32, i32, i32
  }
  func.func @transform_2(%arg0: i32) -> (i32, i32) {
    %c0_i32 = arith.constant 0 : i32
    %c0_i32_0 = arith.constant 0 : i32
    %c0_i32_1 = arith.constant 0 : i32
    return %c0_i32, %c0_i32_0 : i32, i32
  }
  func.func @transform_3(%arg0: i32) -> (i32, i32) {
    %c0_i32 = arith.constant 0 : i32
    %c0_i32_0 = arith.constant 0 : i32
    %c0_i32_1 = arith.constant 0 : i32
    return %c0_i32, %c0_i32_0 : i32, i32
  }
  func.func @transform_4(%arg0: i32) -> (i32, i32, i32) {
    %c0_i32 = arith.constant 0 : i32
    %c0_i32_0 = arith.constant 0 : i32
    %c0_i32_1 = arith.constant 0 : i32
    return %arg0, %c0_i32, %c0_i32_0 : i32, i32, i32
  }
}

</mosaic_0001>

<bundles_post_ra>
// kernel: gconv_pallas.1
= control target key start
LH: loop header
LB: loop body
LE: loop exit
PB: predicated region body
PF: predicated region fallthrough
CT: control target
= control target key end

     0   :  { %9 = vsyncpa [#allocation3], 0  ;;  %s746_s0 = inlined_call_operand.vmem [shape: bf16[2,8,8], index: 0, kind: input, shape index: {}]   ;;  %s747_s1 = inlined_call_operand.vmem [shape: f32[2,8,16], index: 1, kind: input, shape index: {}]   ;;  %s748_s2 = inlined_call_operand.vmem [shape: f32[16,64], index: 2, kind: input, shape index: {}]   ;;  %s749_s3 = inlined_call_operand.vmem [shape: f32[1,64], index: 3, kind: input, shape index: {}]   ;;  %s750_s4 = inlined_call_operand.hbm [shape: f32[2,8,32], index: 4, kind: output, shape index: {}]  }
   0x1   :  { %11 = vsyncpa [#allocation3 + $0x1], 0  ;;  %s639_s15 = smov 0   ;;  %s641_s16 = smov 0  }
   0x2   :  { %s643_s17 = smov 0   ;;  %s645_s18 = smov 0  }
   0x3 LB: > { %s660_s19 = sadd.s32 4294967295, %s608_s18   ;;  %s473_s20 = sadd.s32 4294967294, %s608_s18   ;;  %s608_s18 = sphi %s645_s18, %s756_s18   ;;  %s604_s17 = sphi %s643_s17, %s755_s17   ;;  %s600_s16 = sphi %s641_s16, %s754_s16   ;;  %s596_s15 = sphi %s639_s15, %s753_s15  }
   0x4   : > { %s664_s21 = sadd.s32 1, %s608_s18   ;;  %s118_s22 = sadd.s32 1, %s604_s17 }
   0x5   : > { %s115_s23 = ssub.s32 %s608_s18, %s664_s21  ;;  %p128_p0 = scmp.ne.s32.totalorder %s604_s17, %s600_s16 }
   0x6   : > { %p116_p1 = scmp.eq.s32.totalorder %s115_s23, 0  ;;  %p129_p2 = scmp.eq.s32.totalorder %s660_s19, 1 }
   0x7   : > { %p134_p3 = scmp.ne.s32.totalorder %s600_s16, %s596_s15  ;;  %p135_p4 = scmp.eq.s32.totalorder %s473_s20, 1 }
   0x8   : > { %s675_s24 = scalar_select %p116_p1, %s604_s17, %s118_s22  }
   0x9   : > { %p677_p5 = por %p129_p2, %p128_p0  ;;  %p681_p6 = por %p135_p4, %p134_p3 }
   0xa   : > { %p476_p7 = scmp.ge.s32.totalorder %s608_s18, 1  ;;  %p173_p8 = scmp.lt.s32.totalorder %s608_s18, 3 }
   0xc   : > { %p174_p9 = pnand %p476_p7, %p173_p8 }
   0xd   : > { %p202_p10 = scmp.lt.s32.totalorder (!%p174_p9), %s660_s19, 1  ;;  %s612_s22 = smov (!%p174_p9), 96  }
   0xe   : > { %177 = sbr.rel (%p174_p9) target bundleno = 430 (0x1ae), region = 36  ;;  %s199_s23 = sand.u32 (!%p174_p9), 1, %s600_s16  }
   0xf   : > { %s477_s27 = sshll.u32 (!%p174_p9), %s199_s23, 3  ;;  %s484_s28 = sshll.u32 (!%p174_p9), %s660_s19, 7 }
  0x10   : > { %s201_s29 = scalar_lea.vmem (!%p174_p9), [#allocation2], %s477_s27  ;;  %s711_s7 = scalar_lea.hbm (!%p174_p9), %s750_s4, %s484_s28 }
  0x11   : > { %s402_s30 = sshll.u32 (!%p174_p9), %s201_s29, 4  ;;  %s389_s8 = scalar_lea.sflag (!%p174_p9), [#allocation3], %s199_s23  ;;  %s403_s30 = int_to_ptr.vmem [resolvable:$true] %s402_s30 }
  0x13   : > { %v226_v0 = vld [vmem:[%s748_s2 + $0x8] sm:$0xff]  ;;  %v610_v1 = vmov 0.0   ;;  %v225_v2 = vld [vmem:[%s748_s2] sm:$0xff]  ;;  %vm611_vm0 = vmmov 0   ;;  %s203_s5 = scalar_select %p202_p10, %s660_s19, 1  ;;  %vm234_vm1 = vcmask 130048  }
  0x14   : > { %492 = vmatprep.subr.mxu0 %v610_v1  ;;  %496 = vmatprep.mubr.msk.f32.mxu0 %vm611_vm0, %v610_v1  ;;  %vm213_vm2 = vcmask 64512   ;;  %v480_v15 = vld [vmem:[%s749_s3] ss:$0 sm:$0xff]  ;;  %vm386_vm3 = vcmask 261120   ;;  %s613_s19 = smov [#allocation2]  }
  0x15   : > { %493 = vmatpush3.msra.mxu0 %v226_v0  ;;  %499 = vmatprep.subr.mxu1 %v610_v1  ;;  %s479_s6 = sshll.u32 %s203_s5, 3  ;;  %s478_s10 = sshll.u32 %s203_s5, 2 }
  0x16   : > { %494 = vmatprep.subr.mxu0 %v610_v1  ;;  %501 = vmatprep.mubr.msk.f32.mxu1 %vm611_vm0, %v610_v1  ;;  %s209_s9 = scalar_lea.vmem %s747_s1, %s479_s6  ;;  %s205_s13 = scalar_lea.vmem %s746_s0, %s478_s10 }
  0x17   : > { %495 = vmatpush3.msra.mxu0 %v225_v2  ;;  %v224_v3 = vld [vmem:[%s209_s9] sm:$0xff]  ;;  %s548_s9 = scalar_lea.vmem %s403_s30, 128  ;;  %s552_s10 = sshll.u32 %s613_s19, 4  ;;  %s553_s10 = int_to_ptr.vmem [resolvable:$false] %s552_s10 }
  0x18   : > { %497 = vmatmul.mubr.msk.f32.vlgmr.msra.gmra.mxu0 %vm234_vm1, %v224_v3  ;;  %v210_v4 = vld [vmem:[%s205_s13] sm:$0xf]  ;;  %p549_p11 = scmp.ne.s32.totalorder %s403_s30, %s548_s9  ;;  %s554_s11 = scalar_lea.vmem %s553_s10, 256 }
  0x19   : > { %v211_v5 = vunpack.c.l.bf16 %v210_v4  ;;  %p555_p0 = scmp.lt.s32.totalorder %s403_s30, %s553_s10  ;;  %p556_p1 = scmp.lt.s32.totalorder %s554_s11, %s548_s9 }
  0x1a   : > { %p550_p12 = pnand %p549_p11, %p677_p5 }
  0x1b   : > { %v212_v6 = vand.u32 2147483647, %v211_v5  ;;  %p557_p2 = por %p556_p1, %p555_p0 }
  0x1c   : > { %p551_p13 = pneg %p550_p12 }
  0x1d   : > { %v214_v7 = vsel %vm213_vm2, %v212_v6, 0.0 }
  0x1e   : > { %v215_v8 = vrot.slane %v214_v7, 4  ;;  %p558_p3 = pnand %p557_p2, %p551_p13 }
  0x20   : > { %v216_v9 = vadd.f32 %v215_v8, %v214_v7 }
  0x22   : > { %v217_v10 = vrot.slane %v216_v9, 2 }
  0x24   : > { %v218_v11 = vadd.f32 %v217_v10, %v216_v9 }
  0x26   : > { %v219_v12 = vrot.slane %v218_v11, 1 }
  0x28   : > { %v220_v13 = vadd.f32 %v219_v12, %v218_v11 }
  0x2a   : > { %v221_v14 = vmax.f32 %v220_v13, 1e-12 }
  0x2c   : > { %546 = vrcp.f32 %v221_v14 }
  0x39   : > { %v547_v16 = vpop.eup %546 }
  0x3a   : > { %v223_v20 = vmul.f32 %v547_v16, %v211_v5 }
  0xd8   : > { %v304_v17 = vpop.f32.mrf.mxu0 }
  0xd9   : > { %v305_v18 = vadd.f32 %v480_v15, %v304_v17 }
  0xda   : > { %v498_v19 = vpop.f32.mrf.mxu0 }
  0xdb   : > { %v308_v21 = vmax.f32 %v305_v18, 0.0 }
  0xdd   : > { %310 = vrot.lane.b32.xlu0 %v308_v21, %s612_s22  ;;  %500 = vmatpush3.msra.mxu1 %v308_v21 }
  0xde   : > { %502 = vmatmul.mubr.msk.f32.vlgmr.msra.gmra.mxu1 %vm213_vm2, %v223_v20 }
 0x14f   : > { %v311_v22 = vpop.permute.xlu0 %310 }
 0x19e   : > { %v382_v23 = vpop.f32.mrf.mxu1 }
 0x19f   : > { %v383_v24 = vadd.f32 %v382_v23, %v311_v22 }
 0x1a0   : > { %v503_v25 = vpop.f32.mrf.mxu1 }
 0x1a1   : > { %387 = vst.msk [vmem:[%s201_s29] sm:$0xff] %vm386_vm3, %v383_v24 }
 0x1a2   : > { %561 = shalt.err (!%p558_p3)
}
 0x1a3   : > { %s562_s12 = scalar_lea.hbm %s711_s7, 128  ;;  %s566_s20 = scalar_lea.hbm %s750_s4, 256 }
 0x1a4   : > { %p563_p4 = scmp.ne.s32.totalorder %s711_s7, %s562_s12  ;;  %p567_p9 = scmp.lt.s32.totalorder %s711_s7, %s750_s4 }
 0x1a5   : > { %p568_p10 = scmp.lt.s32.totalorder %s566_s20, %s562_s12 }
 0x1a6   : > { %p564_p7 = pnand %p563_p4, %p677_p5 }
 0x1a7   : > { %p569_p11 = por %p568_p10, %p567_p9 }
 0x1a8   : > { %p565_p8 = pneg %p564_p7 }
 0x1aa   : > { %p570_p12 = pnand %p569_p11, %p565_p8 }
 0x1ac   : > { %573 = shalt.err (!%p570_p12)
}
 0x1ad   : > { %504 = dma.vmem_to_hbm [thread:$0]  (%p677_p5), %s403_s30, 128, %s711_s7, %s389_s8  }
 0x1ae PF: > { %p510_p13 = scmp.ge.s32.totalorder %s608_s18, 2  ;;  %s414_s27 = sand.u32 1, %s596_s15  }
 0x1af   : > { %s415_s28 = scalar_lea.sflag [#allocation3], %s414_s27 }
 0x1b0   : > { %p507_p0 = pnand %p510_p13, %p681_p6 }
 0x1b2   : > { %p508_p1 = pneg %p507_p0 }
 0x1b4   : > { %591 = dma.done.wait (%p508_p1), %s415_s28, 128  }
 0x1b5   : > { %593 = vsyncadd (%p508_p1), %s415_s28, 4294967168  ;;  %p14_p2 = scmp.ge.s32.totalorder %s664_s21, 4   ;;  %s753_s15 = smov %s600_s16 }
 0x1b6   : > { %s754_s16 = smov %s604_s17  ;;  %s755_s17 = smov %s675_s24 }
 0x1b7   : > { %s756_s18 = smov %s664_s21  ;;  %16 = sbr.rel (!%p14_p2) target bundleno = 3 (0x3), region = 74 }
 0x1bc   :  { %420 = vsyncpa [#allocation3], 1 }
 0x1bd   :  { %422 = vsyncpa [#allocation3 + $0x1], 1 }

</bundles_post_ra>
